<compile_context>
chip_gen: v7x
topology: tpu7x:2x2x1
jax: 0.10.0
libtpu: 0.0.40
codegen_flags: <defaults>
</compile_context>

<pallas_src>
import jax
import jax.numpy as jnp
from jax import lax
from jax.experimental import pallas as pl
from jax.experimental.pallas import tpu as pltpu


def _round_up(v, m):
    return (v + m - 1) // m * m


def residual_kernel(x_ref, w3_ref, w1_ref, o_ref, hpad_ref):
    # x_ref:    (NB, H, W, C)     un-padded input block (f32)
    # w3_ref:   (9*C, Cres_p)     im2col 3x3 weights, bf16 (Cres zero-padded to 128k)
    # w1_ref:   (Cres_p, C)       1x1 weights, bf16 (rows zero-padded)
    # o_ref:    (NB, H, W, C)
    # hpad_ref: (NB, H+2, Wp, C)  f32 scratch: ReLU(x) inside a zero halo;
    #                             Wp = round_up(W+2, 8); columns >= W+2 never read.
    NB, H, W, C = x_ref.shape
    rows = NB * H * W

    x = x_ref[...]                                        # (NB, H, W, C) f32

    # Zero only the four 1-wide halo strips (not the whole scratch). The
    # interior is fully overwritten every step, so there is no stale-state
    # hazard even with per-TensorCore scratch under megacore sharding.
    zrow = jnp.zeros((NB, 1, W + 2, C), jnp.float32)
    zcol = jnp.zeros((NB, H, 1, C), jnp.float32)
    hpad_ref[:, 0:1, 0:W + 2, :] = zrow
    hpad_ref[:, H + 1:H + 2, 0:W + 2, :] = zrow
    hpad_ref[:, 1:H + 1, 0:1, :] = zcol
    hpad_ref[:, 1:H + 1, W + 1:W + 2, :] = zcol
    hpad_ref[:, 1:H + 1, 1:W + 1, :] = jnp.maximum(x, 0.0)   # interior ReLU (f32)

    hpad = hpad_ref[...]                                  # (NB, H+2, Wp, C)

    # im2col: build the (rows, 9*C) bf16 patch matrix once (dy-major, dx-minor,
    # matching the wrapper's weight reshape), then one K = 9*C MXU matmul with
    # f32 accumulation.
    taps = [
        hpad[:, dy:dy + H, dx:dx + W, :].reshape(rows, C).astype(jnp.bfloat16)
        for dy in range(3) for dx in range(3)
    ]
    patches = jnp.concatenate(taps, axis=-1)              # (rows, 9*C) bf16

    h = jnp.dot(patches, w3_ref[...], preferred_element_type=jnp.float32)
    h = jnp.maximum(h, 0.0)                               # ReLU in f32, (rows, Cres_p)
    y = jnp.dot(h.astype(jnp.bfloat16), w1_ref[...],
                preferred_element_type=jnp.float32)       # (rows, C) f32

    o_ref[...] = (x + y.reshape(NB, H, W, C)).astype(o_ref.dtype)


@jax.jit
def residual_forward(x_nchw, w3_oihw, w1_oihw):
    """x_nchw: (N, Cin, H, W) f32. w3: (Cres, Cin, 3, 3). w1: (Cout, Cres, 1, 1)."""
    N, Cin, H, W = x_nchw.shape
    Cres = w3_oihw.shape[0]
    Cout = w1_oihw.shape[0]
    assert Cin == Cout, "residual add requires in_channels == num_hiddens"

    # Layout prep (no padded-activation round trip through HBM).
    x_nhwc = jnp.transpose(x_nchw, (0, 2, 3, 1))                       # (N, H, W, C)
    # 3x3 weights OIHW -> im2col layout (9*Cin, Cres); rows ordered (dy, dx, cin)
    # to match the kernel's tap order. Cres zero-padded to a lane-dense multiple
    # of 128 (mathematically exact) and weights pre-cast to bf16 (MXU dtype).
    Cres_p = _round_up(Cres, 128)
    w3 = jnp.transpose(w3_oihw, (2, 3, 1, 0)).reshape(9 * Cin, Cres)
    w3 = jnp.pad(w3, ((0, 0), (0, Cres_p - Cres))).astype(jnp.bfloat16)
    w1 = jnp.transpose(w1_oihw[:, :, 0, 0], (1, 0))                    # (Cres, Cout)
    w1 = jnp.pad(w1, ((0, Cres_p - Cres), (0, 0))).astype(jnp.bfloat16)

    # ---- per-generation block sizing (trace-time host code) ----
    try:
        vmem_cap = int(pltpu.get_tpu_info().vmem_capacity_bytes)
    except Exception:
        vmem_cap = 64 * 1024 * 1024          # conservative default: v7x per-core VMEM
    row_budget = 4096 if vmem_cap >= 96 * 1024 * 1024 else 2048

    nb = max(1, row_budget // (H * W))
    nb = min(nb, N)
    if N > 1:
        # Guarantee >= 2 grid steps so the "parallel" axis can shard across
        # v7x's two TensorCores (harmless on single-TC v5e/v6e).
        nb = min(nb, (N + 1) // 2)
    num_blocks = (N + nb - 1) // nb           # ceil-div grid; last block may be partial

    Wp = _round_up(W + 2, 8)                  # 8-sublane-aligned halo scratch width
    rows = nb * H * W

    # VMEM footprint estimate (+50% headroom), capped at 3/4 of physical VMEM.
    est = (
        2 * 2 * nb * H * W * Cin * 4                      # double-buffered in + out (f32)
        + nb * (H + 2) * Wp * Cin * 4                     # halo scratch (f32)
        + 2 * rows * 9 * Cin * 2                          # bf16 patches + tap temporaries
        + rows * Cres_p * (4 + 2)                         # h (f32) + bf16 copy for 2nd dot
        + 2 * (9 * Cin * Cres_p + Cres_p * Cout) * 2      # double-buffered bf16 weights
    )
    vmem_limit = max(16 * 1024 * 1024,
                     min(int(est * 1.5) + (8 << 20), vmem_cap * 3 // 4))

    out_nhwc = pl.pallas_call(
        residual_kernel,
        out_shape=jax.ShapeDtypeStruct((N, H, W, Cout), x_nchw.dtype),
        grid_spec=pltpu.PrefetchScalarGridSpec(
            num_scalar_prefetch=0,
            grid=(num_blocks,),
            in_specs=[
                pl.BlockSpec((nb, H, W, Cin), lambda b: (b, 0, 0, 0)),
                pl.BlockSpec((9 * Cin, Cres_p), lambda b: (0, 0)),
                pl.BlockSpec((Cres_p, Cout), lambda b: (0, 0)),
            ],
            out_specs=pl.BlockSpec((nb, H, W, Cout), lambda b: (b, 0, 0, 0)),
            scratch_shapes=[pltpu.VMEM((nb, H + 2, Wp, Cin), jnp.float32)],
        ),
        compiler_params=pltpu.CompilerParams(
            dimension_semantics=("parallel",),
            vmem_limit_bytes=int(vmem_limit),
        ),
    )(x_nhwc, w3, w1)

    return jnp.transpose(out_nhwc, (0, 3, 1, 2))                       # back to NCHW


def residual_reference(x_nchw, w3_oihw, w1_oihw):
    """Pure-JAX f32/HIGHEST reference (lax.conv) matching PyTorch semantics."""
    h = jnp.maximum(x_nchw, 0.0)
    h = lax.conv_general_dilated(
        h, w3_oihw, window_strides=(1, 1), padding=((1, 1), (1, 1)),
        dimension_numbers=("NCHW", "OIHW", "NCHW"),
        precision=lax.Precision.HIGHEST)
    h = jnp.maximum(h, 0.0)
    h = lax.conv_general_dilated(
        h, w1_oihw, window_strides=(1, 1), padding=((0, 0), (0, 0)),
        dimension_numbers=("NCHW", "OIHW", "NCHW"),
        precision=lax.Precision.HIGHEST)
    return x_nchw + h


if __name__ == "__main__":
    # Module constants from the original file; small spatial size for the demo.
    N, H, W = 2, 8, 8
    num_hiddens = 128            # == in_channels (required by the residual add)
    num_residual_hiddens = 32

    key = jax.random.PRNGKey(0)
    kx, k3, k1 = jax.random.split(key, 3)

    x = jax.random.normal(kx, (N, num_hiddens, H, W), dtype=jnp.float32)
    # Deterministic synthetic parameters (PyTorch OIHW layout).
    w3 = 0.1 * jax.random.normal(
        k3, (num_residual_hiddens, num_hiddens, 3, 3), dtype=jnp.float32)
    w1 = 0.1 * jax.random.normal(
        k1, (num_hiddens, num_residual_hiddens, 1, 1), dtype=jnp.float32)

    out = jax.block_until_ready(residual_forward(x, w3, w1))
    ref = residual_reference(x, w3, w1)

    assert out.shape == ref.shape == (N, num_hiddens, H, W)
    # bf16 MXU operands with f32 accumulation: typical max abs err vs the
    # f32/HIGHEST reference is ~1e-2 at these magnitudes, so use a 5e-2 bound.
    max_err = float(jnp.max(jnp.abs(out - ref)))
    assert jnp.allclose(out, ref, atol=5e-2, rtol=5e-2), (
        f"mismatch vs reference, max abs err = {max_err}")

    print("KERNEL_OK")
</pallas_src>

<mosaic_0001>
module attributes {stable_mosaic.version = 11 : i64} {
  func.func @residual_kernel(%arg0: i32, %arg1: memref<1x8x8x128xf32, #tpu.memory_space<vmem>>, %arg2: memref<1152x128xbf16, #tpu.memory_space<vmem>>, %arg3: memref<128x128xbf16, #tpu.memory_space<vmem>>, %arg4: memref<1x8x8x128xf32, #tpu.memory_space<vmem>>, %arg5: memref<1x10x16x128xf32, #tpu.memory_space<vmem>>) attributes {dimension_semantics = [#tpu.dimension_semantics<parallel>], iteration_bounds = array<i64: 2>, scalar_prefetch = 0 : i64, scratch_operands = 1 : i64, tpu.core_type = #tpu.core_type<tc>, window_params = [{transform_indices = @transform_0, window_bounds = array<i64: 1, 8, 8, 128>}, {pipeline_mode = #tpu.pipeline_mode<synchronous>, transform_indices = @transform_1, window_bounds = array<i64: 1152, 128>}, {pipeline_mode = #tpu.pipeline_mode<synchronous>, transform_indices = @transform_2, window_bounds = array<i64: 128, 128>}, {transform_indices = @transform_3, window_bounds = array<i64: 1, 8, 8, 128>}]} {
    %c0 = arith.constant 0 : index
    %c0_0 = arith.constant 0 : index
    %c0_1 = arith.constant 0 : index
    %c0_2 = arith.constant 0 : index
    %0 = vector.load %arg1[%c0, %c0_0, %c0_1, %c0_2] : memref<1x8x8x128xf32, #tpu.memory_space<vmem>>, vector<1x8x8x128xf32>
    %cst = arith.constant 0.000000e+00 : f32
    %1 = vector.broadcast %cst : f32 to vector<1x1x10x128xf32>
    %cst_3 = arith.constant 0.000000e+00 : f32
    %2 = vector.broadcast %cst_3 : f32 to vector<1x8x1x128xf32>
    %c0_4 = arith.constant 0 : index
    %c0_5 = arith.constant 0 : index
    %c0_6 = arith.constant 0 : index
    %c0_7 = arith.constant 0 : index
    %3 = vector.load %arg5[%c0_4, %c0_5, %c0_6, %c0_7] : memref<1x10x16x128xf32, #tpu.memory_space<vmem>>, vector<1x1x10x128xf32>
    tpu.vector_store %arg5[%c0_4, %c0_5, %c0_6, %c0_7], %1 {strides = array<i32>} : memref<1x10x16x128xf32, #tpu.memory_space<vmem>>, vector<1x1x10x128xf32>,
    %c0_8 = arith.constant 0 : index
    %c9 = arith.constant 9 : index
    %c0_9 = arith.constant 0 : index
    %c0_10 = arith.constant 0 : index
    %4 = vector.load %arg5[%c0_8, %c9, %c0_9, %c0_10] : memref<1x10x16x128xf32, #tpu.memory_space<vmem>>, vector<1x1x10x128xf32>
    tpu.vector_store %arg5[%c0_8, %c9, %c0_9, %c0_10], %1 {strides = array<i32>} : memref<1x10x16x128xf32, #tpu.memory_space<vmem>>, vector<1x1x10x128xf32>,
    %c0_11 = arith.constant 0 : index
    %c1 = arith.constant 1 : index
    %c0_12 = arith.constant 0 : index
    %c0_13 = arith.constant 0 : index
    %5 = vector.load %arg5[%c0_11, %c1, %c0_12, %c0_13] : memref<1x10x16x128xf32, #tpu.memory_space<vmem>>, vector<1x8x1x128xf32>
    tpu.vector_store %arg5[%c0_11, %c1, %c0_12, %c0_13], %2 {strides = array<i32>} : memref<1x10x16x128xf32, #tpu.memory_space<vmem>>, vector<1x8x1x128xf32>,
    %c0_14 = arith.constant 0 : index
    %c1_15 = arith.constant 1 : index
    %c9_16 = arith.constant 9 : index
    %c0_17 = arith.constant 0 : index
    %6 = vector.load %arg5[%c0_14, %c1_15, %c9_16, %c0_17] : memref<1x10x16x128xf32, #tpu.memory_space<vmem>>, vector<1x8x1x128xf32>
    tpu.vector_store %arg5[%c0_14, %c1_15, %c9_16, %c0_17], %2 {strides = array<i32>} : memref<1x10x16x128xf32, #tpu.memory_space<vmem>>, vector<1x8x1x128xf32>,
    %cst_18 = arith.constant 0.000000e+00 : f32
    %7 = vector.broadcast %cst_18 : f32 to vector<1x8x8x128xf32>
    %8 = arith.maximumf %0, %7 : vector<1x8x8x128xf32>
    %c0_19 = arith.constant 0 : index
    %c1_20 = arith.constant 1 : index
    %c1_21 = arith.constant 1 : index
    %c0_22 = arith.constant 0 : index
    %9 = vector.load %arg5[%c0_19, %c1_20, %c1_21, %c0_22] : memref<1x10x16x128xf32, #tpu.memory_space<vmem>>, vector<1x8x8x128xf32>
    tpu.vector_store %arg5[%c0_19, %c1_20, %c1_21, %c0_22], %8 {strides = array<i32>} : memref<1x10x16x128xf32, #tpu.memory_space<vmem>>, vector<1x8x8x128xf32>,
    %c0_23 = arith.constant 0 : index
    %c0_24 = arith.constant 0 : index
    %c0_25 = arith.constant 0 : index
    %c0_26 = arith.constant 0 : index
    %10 = vector.load %arg5[%c0_23, %c0_24, %c0_25, %c0_26] : memref<1x10x16x128xf32, #tpu.memory_space<vmem>>, vector<1x10x16x128xf32>
    %11 = vector.extract_strided_slice %10 {offsets = [0, 0, 0, 0], sizes = [1, 8, 8, 128], strides = [1, 1, 1, 1]} : vector<1x10x16x128xf32> to vector<1x8x8x128xf32>
    %12 = vector.shape_cast %11 : vector<1x8x8x128xf32> to vector<64x128xf32>
    %13 = arith.truncf %12 : vector<64x128xf32> to vector<64x128xbf16>
    %14 = vector.extract_strided_slice %10 {offsets = [0, 0, 1, 0], sizes = [1, 8, 8, 128], strides = [1, 1, 1, 1]} : vector<1x10x16x128xf32> to vector<1x8x8x128xf32>
    %15 = vector.shape_cast %14 : vector<1x8x8x128xf32> to vector<64x128xf32>
    %16 = arith.truncf %15 : vector<64x128xf32> to vector<64x128xbf16>
    %17 = vector.extract_strided_slice %10 {offsets = [0, 0, 2, 0], sizes = [1, 8, 8, 128], strides = [1, 1, 1, 1]} : vector<1x10x16x128xf32> to vector<1x8x8x128xf32>
    %18 = vector.shape_cast %17 : vector<1x8x8x128xf32> to vector<64x128xf32>
    %19 = arith.truncf %18 : vector<64x128xf32> to vector<64x128xbf16>
    %20 = vector.extract_strided_slice %10 {offsets = [0, 1, 0, 0], sizes = [1, 8, 8, 128], strides = [1, 1, 1, 1]} : vector<1x10x16x128xf32> to vector<1x8x8x128xf32>
    %21 = vector.shape_cast %20 : vector<1x8x8x128xf32> to vector<64x128xf32>
    %22 = arith.truncf %21 : vector<64x128xf32> to vector<64x128xbf16>
    %23 = vector.extract_strided_slice %10 {offsets = [0, 1, 1, 0], sizes = [1, 8, 8, 128], strides = [1, 1, 1, 1]} : vector<1x10x16x128xf32> to vector<1x8x8x128xf32>
    %24 = vector.shape_cast %23 : vector<1x8x8x128xf32> to vector<64x128xf32>
    %25 = arith.truncf %24 : vector<64x128xf32> to vector<64x128xbf16>
    %26 = vector.extract_strided_slice %10 {offsets = [0, 1, 2, 0], sizes = [1, 8, 8, 128], strides = [1, 1, 1, 1]} : vector<1x10x16x128xf32> to vector<1x8x8x128xf32>
    %27 = vector.shape_cast %26 : vector<1x8x8x128xf32> to vector<64x128xf32>
    %28 = arith.truncf %27 : vector<64x128xf32> to vector<64x128xbf16>
    %29 = vector.extract_strided_slice %10 {offsets = [0, 2, 0, 0], sizes = [1, 8, 8, 128], strides = [1, 1, 1, 1]} : vector<1x10x16x128xf32> to vector<1x8x8x128xf32>
    %30 = vector.shape_cast %29 : vector<1x8x8x128xf32> to vector<64x128xf32>
    %31 = arith.truncf %30 : vector<64x128xf32> to vector<64x128xbf16>
    %32 = vector.extract_strided_slice %10 {offsets = [0, 2, 1, 0], sizes = [1, 8, 8, 128], strides = [1, 1, 1, 1]} : vector<1x10x16x128xf32> to vector<1x8x8x128xf32>
    %33 = vector.shape_cast %32 : vector<1x8x8x128xf32> to vector<64x128xf32>
    %34 = arith.truncf %33 : vector<64x128xf32> to vector<64x128xbf16>
    %35 = vector.extract_strided_slice %10 {offsets = [0, 2, 2, 0], sizes = [1, 8, 8, 128], strides = [1, 1, 1, 1]} : vector<1x10x16x128xf32> to vector<1x8x8x128xf32>
    %36 = vector.shape_cast %35 : vector<1x8x8x128xf32> to vector<64x128xf32>
    %37 = arith.truncf %36 : vector<64x128xf32> to vector<64x128xbf16>
    %38 = tpu.concatenate %13, %16, %19, %22, %25, %28, %31, %34, %37 in 1 : vector<64x128xbf16>, vector<64x128xbf16>, vector<64x128xbf16>, vector<64x128xbf16>, vector<64x128xbf16>, vector<64x128xbf16>, vector<64x128xbf16>, vector<64x128xbf16>, vector<64x128xbf16> -> vector<64x1152xbf16>
    %c0_27 = arith.constant 0 : index
    %c0_28 = arith.constant 0 : index
    %39 = vector.load %arg2[%c0_27, %c0_28] : memref<1152x128xbf16, #tpu.memory_space<vmem>>, vector<1152x128xbf16>
    %cst_29 = arith.constant dense<0.000000e+00> : vector<64x128xf32>
    %40 = tpu.matmul %38, %39, %cst_29 {dimension_numbers = #tpu.dot_dimension_numbers<[1], [0], [0], [1], [0, 0, 1, 1], [], []>} : vector<64x1152xbf16>, vector<1152x128xbf16>, vector<64x128xf32> -> vector<64x128xf32>
    %cst_30 = arith.constant 0.000000e+00 : f32
    %41 = vector.broadcast %cst_30 : f32 to vector<64x128xf32>
    %42 = arith.maximumf %40, %41 : vector<64x128xf32>
    %43 = arith.truncf %42 : vector<64x128xf32> to vector<64x128xbf16>
    %c0_31 = arith.constant 0 : index
    %c0_32 = arith.constant 0 : index
    %44 = vector.load %arg3[%c0_31, %c0_32] : memref<128x128xbf16, #tpu.memory_space<vmem>>, vector<128x128xbf16>
    %cst_33 = arith.constant dense<0.000000e+00> : vector<64x128xf32>
    %45 = tpu.matmul %43, %44, %cst_33 {dimension_numbers = #tpu.dot_dimension_numbers<[1], [0], [0], [1], [0, 0, 1, 1], [], []>} : vector<64x128xbf16>, vector<128x128xbf16>, vector<64x128xf32> -> vector<64x128xf32>
    %46 = vector.shape_cast %45 : vector<64x128xf32> to vector<1x8x8x128xf32>
    %47 = arith.addf %0, %46 : vector<1x8x8x128xf32>
    %c0_34 = arith.constant 0 : index
    %c0_35 = arith.constant 0 : index
    %c0_36 = arith.constant 0 : index
    %c0_37 = arith.constant 0 : index
    %48 = vector.load %arg4[%c0_34, %c0_35, %c0_36, %c0_37] : memref<1x8x8x128xf32, #tpu.memory_space<vmem>>, vector<1x8x8x128xf32>
    tpu.vector_store %arg4[%c0_34, %c0_35, %c0_36, %c0_37], %47 {strides = array<i32>} : memref<1x8x8x128xf32, #tpu.memory_space<vmem>>, vector<1x8x8x128xf32>,
    return
  }
  func.func @transform_0(%arg0: i32) -> (i32, i32, i32, i32) {
    %c0_i32 = arith.constant 0 : i32
    %c0_i32_0 = arith.constant 0 : i32
    %c0_i32_1 = arith.constant 0 : i32
    %c0_i32_2 = arith.constant 0 : i32
    return %arg0, %c0_i32, %c0_i32_0, %c0_i32_1 : i32, i32, i32, i32
  }
  func.func @transform_1(%arg0: i32) -> (i32, i32) {
    %c0_i32 = arith.constant 0 : i32
    %c0_i32_0 = arith.constant 0 : i32
    %c0_i32_1 = arith.constant 0 : i32
    return %c0_i32, %c0_i32_0 : i32, i32
  }
  func.func @transform_2(%arg0: i32) -> (i32, i32) {
    %c0_i32 = arith.constant 0 : i32
    %c0_i32_0 = arith.constant 0 : i32
    %c0_i32_1 = arith.constant 0 : i32
    return %c0_i32, %c0_i32_0 : i32, i32
  }
  func.func @transform_3(%arg0: i32) -> (i32, i32, i32, i32) {
    %c0_i32 = arith.constant 0 : i32
    %c0_i32_0 = arith.constant 0 : i32
    %c0_i32_1 = arith.constant 0 : i32
    %c0_i32_2 = arith.constant 0 : i32
    return %arg0, %c0_i32, %c0_i32_0, %c0_i32_1 : i32, i32, i32, i32
  }
}

</mosaic_0001>

<bundles_post_ra>
// kernel: residual_forward.1
= control target key start
LH: loop header
LB: loop body
LE: loop exit
PB: predicated region body
PF: predicated region fallthrough
CT: control target
= control target key end

     0   :  { %8 = vsyncpa [#allocation4], 0  ;;  %s2558_s0 = inlined_call_operand.vmem [shape: f32[2,8,8,128], index: 0, kind: input, shape index: {}]   ;;  %s2559_s1 = inlined_call_operand.vmem [shape: bf16[1152,128], index: 1, kind: input, shape index: {}]   ;;  %s2560_s2 = inlined_call_operand.vmem [shape: bf16[128,128], index: 2, kind: input, shape index: {}]   ;;  %s2561_s3 = inlined_call_operand.hbm [shape: f32[2,8,8,128], index: 3, kind: output, shape index: {}]  }
   0x1   :  { %10 = vsyncpa [#allocation4 + $0x1], 0  ;;  %s2037_s12 = smov 0   ;;  %s2039_s13 = smov 0  }
   0x2   :  { %s2041_s14 = smov 0   ;;  %s2043_s15 = smov 0  }
   0x3 LB: > { %s2058_s16 = sadd.s32 4294967295, %s2011_s15   ;;  %s1499_s17 = sadd.s32 4294967294, %s2011_s15   ;;  %s2011_s15 = sphi %s2043_s15, %s2567_s15   ;;  %s2007_s14 = sphi %s2041_s14, %s2566_s14   ;;  %s2003_s13 = sphi %s2039_s13, %s2565_s13   ;;  %s1999_s12 = sphi %s2037_s12, %s2564_s12  }
   0x4   : > { %s2062_s18 = sadd.s32 1, %s2011_s15   ;;  %s91_s19 = sadd.s32 1, %s2007_s14 }
   0x5   : > { %s88_s20 = ssub.s32 %s2011_s15, %s2062_s18  ;;  %p101_p0 = scmp.ne.s32.totalorder %s2007_s14, %s2003_s13 }
   0x6   : > { %p89_p1 = scmp.eq.s32.totalorder %s88_s20, 0  ;;  %p102_p2 = scmp.eq.s32.totalorder %s2058_s16, 1 }
   0x7   : > { %p107_p3 = scmp.ne.s32.totalorder %s2003_s13, %s1999_s12  ;;  %p108_p4 = scmp.eq.s32.totalorder %s1499_s17, 1 }
   0x8   : > { %s2073_s21 = scalar_select %p89_p1, %s2007_s14, %s91_s19  }
   0x9   : > { %p2075_p5 = por %p102_p2, %p101_p0  ;;  %p2079_p6 = por %p108_p4, %p107_p3 }
   0xa   : > { %p1502_p7 = scmp.ge.s32.totalorder %s2011_s15, 1  ;;  %p140_p8 = scmp.lt.s32.totalorder %s2011_s15, 3 }
   0xc   : > { %p141_p9 = pnand %p1502_p7, %p140_p8 }
   0xd   : > { %v1867_v0 = vld [vmem:[%s2559_s1 + $0x40] sm:$0xff] (!%p141_p9)   ;;  %v2013_v3 = vmov (!%p141_p9), 0.0   ;;  %v1871_v5 = vld [vmem:[%s2559_s1 + $0x48] sm:$0xff] (!%p141_p9)   ;;  %v1875_v9 = vld [vmem:[%s2559_s1 + $0x50] sm:$0xff] (!%p141_p9)   ;;  %p164_p10 = scmp.lt.s32.totalorder (!%p141_p9), %s2058_s16, 1  ;;  %vm256_vm0 = vcmask (!%p141_p9), 1046528  }
   0xe   : > { %144 = sbr.rel (%p141_p9) target bundleno = 573 (0x23d), region = 32  ;;  %v1868_v1 = vld [vmem:[%s2559_s1 + $0xc0] sm:$0xff] (!%p141_p9)   ;;  %1593 = vmatprep.subr.bf16.mxu0 (!%p141_p9), %v1867_v0  ;;  %179 = vst [vmem:[#allocation2 + $0x8] sm:$0x3] (!%p141_p9), %v2013_v3  ;;  %184 = vst [vmem:[#allocation2 + $0x10] sm:$0x1] (!%p141_p9), %v2013_v3 }
   0xf   : > { %v1869_v2 = vld [vmem:[%s2559_s1] sm:$0xff] (!%p141_p9)   ;;  %185 = vst [vmem:[#allocation2 + $0x20] sm:$0x1] (!%p141_p9), %v2013_v3  ;;  %192 = vst [vmem:[#allocation2 + $0x19] sm:$0x1] (!%p141_p9), %v2013_v3  ;;  %1633 = vmatprep.subr.bf16.mxu1 (!%p141_p9), %v1868_v1  ;;  %v1872_v6 = vld [vmem:[%s2559_s1 + $0xc8] sm:$0xff] (!%p141_p9)  }
  0x10   : > { %193 = vst [vmem:[#allocation2 + $0x29] sm:$0x1] (!%p141_p9), %v2013_v3  ;;  %182 = vst [vmem:[#allocation2 + $0x98] sm:$0x3] (!%p141_p9), %v2013_v3  ;;  %v1870_v4 = vld [vmem:[%s2559_s1 + $0x80] sm:$0xff] (!%p141_p9)   ;;  %1594 = vmatpush3.bf16.msra.mxu0 (!%p141_p9), %v1869_v2  ;;  %v1873_v7 = vld [vmem:[%s2559_s1 + $0x8] sm:$0xff] (!%p141_p9)  }
  0x11   : > { %186 = vst [vmem:[#allocation2 + $0x30] sm:$0x1] (!%p141_p9), %v2013_v3  ;;  %187 = vst [vmem:[#allocation2 + $0x40] sm:$0x1] (!%p141_p9), %v2013_v3  ;;  %1634 = vmatpush3.bf16.msra.mxu1 (!%p141_p9), %v1870_v4  ;;  %1595 = vmatprep.subr.bf16.mxu0 (!%p141_p9), %v1871_v5  ;;  %v1874_v8 = vld [vmem:[%s2559_s1 + $0x88] sm:$0xff] (!%p141_p9)   ;;  %v1876_v10 = vld [vmem:[%s2559_s1 + $0xd0] sm:$0xff] (!%p141_p9)  }
  0x12   : > { %188 = vst [vmem:[#allocation2 + $0x50] sm:$0x1] (!%p141_p9), %v2013_v3  ;;  %189 = vst [vmem:[#allocation2 + $0x60] sm:$0x1] (!%p141_p9), %v2013_v3  ;;  %1635 = vmatprep.subr.bf16.mxu1 (!%p141_p9), %v1872_v6  ;;  %v1877_v11 = vld [vmem:[%s2559_s1 + $0x10] sm:$0xff] (!%p141_p9)   ;;  %v1879_v13 = vld [vmem:[%s2559_s1 + $0x58] sm:$0xff] (!%p141_p9)  }
  0x13   : > { %190 = vst [vmem:[#allocation2 + $0x70] sm:$0x1] (!%p141_p9), %v2013_v3  ;;  %191 = vst [vmem:[#allocation2 + $0x80] sm:$0x1] (!%p141_p9), %v2013_v3  ;;  %v1878_v12 = vld [vmem:[%s2559_s1 + $0x90] sm:$0xff] (!%p141_p9)   ;;  %v1880_v14 = vld [vmem:[%s2559_s1 + $0xd8] sm:$0xff] (!%p141_p9)  }
  0x14   : > { %194 = vst [vmem:[#allocation2 + $0x39] sm:$0x1] (!%p141_p9), %v2013_v3  ;;  %195 = vst [vmem:[#allocation2 + $0x49] sm:$0x1] (!%p141_p9), %v2013_v3  ;;  %1596 = vmatpush3.bf16.msra.mxu0 (!%p141_p9), %v1873_v7  ;;  %v1881_v15 = vld [vmem:[%s2559_s1 + $0x18] sm:$0xff] (!%p141_p9)   ;;  %v1883_v17 = vld [vmem:[%s2559_s1 + $0x60] sm:$0xff] (!%p141_p9)  }
  0x15   : > { %196 = vst [vmem:[#allocation2 + $0x59] sm:$0x1] %v2013_v3  ;;  %197 = vst [vmem:[#allocation2 + $0x69] sm:$0x1] %v2013_v3  ;;  %1636 = vmatpush3.bf16.msra.mxu1 %v1874_v8  ;;  %1597 = vmatprep.subr.bf16.mxu0 %v1875_v9  ;;  %v1882_v16 = vld [vmem:[%s2559_s1 + $0x98] sm:$0xff]   ;;  %v1884_v18 = vld [vmem:[%s2559_s1 + $0xe0] sm:$0xff]  }
  0x16   : > { %198 = vst [vmem:[#allocation2 + $0x79] sm:$0x1] %v2013_v3  ;;  %199 = vst [vmem:[#allocation2 + $0x89] sm:$0x1] %v2013_v3  ;;  %1637 = vmatprep.subr.bf16.mxu1 %v1876_v10  ;;  %v1885_v19 = vld [vmem:[%s2559_s1 + $0x20] sm:$0xff]   ;;  %v1887_v21 = vld [vmem:[%s2559_s1 + $0x68] sm:$0xff]  }
  0x17   : > { %v1886_v20 = vld [vmem:[%s2559_s1 + $0xa0] sm:$0xff]   ;;  %v1888_v22 = vld [vmem:[%s2559_s1 + $0xe8] sm:$0xff]   ;;  %s165_s7 = scalar_select %p164_p10, %s2058_s16, 1  ;;  %v1891_v25 = vld [vmem:[%s2559_s1 + $0x70] sm:$0xff]   ;;  %v2215_v40 = vrot.slane %v2013_v3, 1  ;;  %vm293_vm1 = vcmask 1045504  }
  0x18   : > { %1598 = vmatpush3.bf16.msra.mxu0 %v1877_v11  ;;  %v1889_v23 = vld [vmem:[%s2559_s1 + $0x28] sm:$0xff]   ;;  %v1892_v26 = vld [vmem:[%s2559_s1 + $0xf0] sm:$0xff]   ;;  %v1895_v29 = vld [vmem:[%s2559_s1 + $0x78] sm:$0xff]   ;;  %v2218_v43 = vrot.slane %v2013_v3, 2  ;;  %s161_s5 = sand.u32 1, %s2003_s13   ;;  %s1592_s9 = sshll.u32 %s2058_s16, 10 }
  0x19   : > { %1638 = vmatpush3.bf16.msra.mxu1 %v1878_v12  ;;  %1599 = vmatprep.subr.bf16.mxu0 %v1879_v13  ;;  %v1890_v24 = vld [vmem:[%s2559_s1 + $0xa8] sm:$0xff]   ;;  %v1893_v27 = vld [vmem:[%s2559_s1 + $0x30] sm:$0xff]   ;;  %s1591_s25 = sshll.u32 %s165_s7, 6  ;;  %v1896_v30 = vld [vmem:[%s2559_s1 + $0xf8] sm:$0xff]   ;;  %s1503_s6 = sshll.u32 %s161_s5, 6 }
  0x1a   : > { %1639 = vmatprep.subr.bf16.mxu1 %v1880_v14  ;;  %v1894_v28 = vld [vmem:[%s2559_s1 + $0xb0] sm:$0xff]   ;;  %s2198_s8 = scalar_lea.vmem %s2558_s0, %s1591_s25  ;;  %v1897_v31 = vld [vmem:[%s2559_s1 + $0x38] sm:$0xff]   ;;  %v1899_v37 = vld [vmem:[%s2559_s1 + $0x140] sm:$0xff]   ;;  %s163_s7 = scalar_lea.vmem [#allocation3], %s1503_s6 }
  0x1b   : > { %v1898_v32 = vld [vmem:[%s2559_s1 + $0xb8] sm:$0xff]   ;;  %v170_v33 = vld [vmem:[%s2198_s8] sm:$0xff]  ;;  %v171_v34 = vld [vmem:[%s2198_s8 + $0x8] sm:$0xff]  ;;  %s1437_s10 = sshll.u32 %s163_s7, 4  ;;  %s2510_s17 = scalar_lea.hbm %s2561_s3, %s1592_s9  ;;  %s2512_s10 = int_to_ptr.vmem [resolvable:$true] %s1437_s10 }
  0x1c   : > { %1600 = vmatpush3.bf16.msra.mxu0 %v1881_v15  ;;  %v200_v35 = vmax.f32 %v170_v33, 0.0  ;;  %v201_v36 = vmax.f32 %v171_v34, 0.0  ;;  %v217_v38 = vld [vmem:[#allocation2 + $0x8] sm:$0xff]  ;;  %v1901_v39 = vld [vmem:[%s2559_s1 + $0x1c0] sm:$0xff]   ;;  %v2221_v44 = vld [vmem:[%s2198_s8 + $0x10] sm:$0xff]  ;;  %s2517_s16 = scalar_lea.sflag [#allocation4], %s161_s5 }
  0x1d   : > { %1640 = vmatpush3.bf16.msra.mxu1 %v1882_v16  ;;  %1601 = vmatprep.subr.bf16.mxu0 %v1883_v17  ;;  %v258_v41 = vrot.slane %v217_v38, 1  ;;  %v295_v42 = vrot.slane %v217_v38, 2  ;;  %v202_v45 = vmax.f32 %v2221_v44, 0.0  ;;  %v2225_v46 = vld [vmem:[%s2198_s8 + $0x18] sm:$0xff]  ;;  %v1900_v59 = vld [vmem:[%s2559_s1 + $0x100] sm:$0xff]   ;;  %v1903_v63 = vld [vmem:[%s2559_s1 + $0x148] sm:$0xff]  }
  0x1e   : > { %1641 = vmatprep.subr.bf16.mxu1 %v1884_v18  ;;  %208 = vst [vmem:[#allocation2 + $0x11] sm:$0xff] %v200_v35  ;;  %209 = vst [vmem:[#allocation2 + $0x21] sm:$0xff] %v201_v36  ;;  %v203_v50 = vmax.f32 %v2225_v46, 0.0  ;;  %v1902_v60 = vld [vmem:[%s2559_s1 + $0x180] sm:$0xff]   ;;  %v1905_v0 = vld [vmem:[%s2559_s1 + $0x1c8] sm:$0xff]   ;;  %s1949_s19 = scalar_lea.vmem %s2512_s10, 1024 }
  0x1f   : > { %v259_v51 = vsel %vm256_vm0, %v2215_v40, %v258_v41  ;;  %210 = vst [vmem:[#allocation2 + $0x31] sm:$0xff] %v202_v45  ;;  %v296_v57 = vsel %vm293_vm1, %v2218_v43, %v295_v42  ;;  %v1904_v7 = vld [vmem:[%s2559_s1 + $0x108] sm:$0xff]   ;;  %v1907_v13 = vld [vmem:[%s2559_s1 + $0x150] sm:$0xff]   ;;  %v1913_v33 = vld [vmem:[%s2559_s1 + $0x1d8] sm:$0xff]   ;;  %p1950_p11 = scmp.ne.s32.totalorder %s2512_s10, %s1949_s19  ;;  %s2014_s20 = smov [#allocation3]  }
  0x20   : > { %1602 = vmatpush3.bf16.msra.mxu0 %v1885_v19  ;;  %211 = vst [vmem:[#allocation2 + $0x41] sm:$0xff] %v203_v50  ;;  %v1906_v10 = vld [vmem:[%s2559_s1 + $0x188] sm:$0xff]   ;;  %v1915_v45 = vld [vmem:[%s2559_s1 + $0x160] sm:$0xff]   ;;  %s1953_s24 = sshll.u32 %s2014_s20, 4  ;;  %s1954_s24 = int_to_ptr.vmem [resolvable:$false] %s1953_s24 }
  0x21   : > { %1642 = vmatpush3.bf16.msra.mxu1 %v1886_v20  ;;  %1603 = vmatprep.subr.bf16.mxu0 %v1887_v21  ;;  %v1918_v50 = vld [vmem:[%s2559_s1 + $0x1a0] sm:$0xff]   ;;  %p1951_p12 = pnand %p1950_p11, %p2075_p5  ;;  %s1955_s25 = scalar_lea.vmem %s1954_s24, 2048 }
  0x22   : > { %1643 = vmatprep.subr.bf16.mxu1 %v1888_v22  ;;  %v1908_v22 = vld [vmem:[%s2559_s1 + $0x110] sm:$0xff]   ;;  %p1956_p0 = scmp.lt.s32.totalorder %s2512_s10, %s1954_s24  ;;  %p1957_p1 = scmp.lt.s32.totalorder %s1955_s25, %s1949_s19 }
  0x23   : > { %p1952_p13 = pneg %p1951_p12 }
  0x24   : > { %1604 = vmatpush3.bf16.msra.mxu0 %v1889_v23  ;;  %v1909_v23 = vld [vmem:[%s2559_s1 + $0x1d0] sm:$0xff]   ;;  %p1958_p2 = por %p1957_p1, %p1956_p0 }
  0x25   : > { %1644 = vmatpush3.bf16.msra.mxu1 %v1890_v24  ;;  %1605 = vmatprep.subr.bf16.mxu0 %v1891_v25  ;;  %v218_v47 = vld [vmem:[#allocation2 + $0x10] sm:$0xff]  ;;  %v219_v48 = vld [vmem:[#allocation2 + $0x18] sm:$0xff]  ;;  %v220_v49 = vld [vmem:[#allocation2 + $0x20] sm:$0xff] }
  0x26   : > { %1645 = vmatprep.subr.bf16.mxu1 %v1892_v26  ;;  %v260_v52 = vrot.slane %v218_v47, 1  ;;  %v261_v53 = vrot.slane %v219_v48, 1  ;;  %v298_v54 = vrot.slane %v219_v48, 2  ;;  %v221_v55 = vld [vmem:[#allocation2 + $0x28] sm:$0xff]  ;;  %v330_v56 = vpack.c.bf16 %v220_v49, %v218_v47  ;;  %v222_v11 = vld [vmem:[#allocation2 + $0x30] sm:$0xff]  ;;  %v223_v12 = vld [vmem:[#allocation2 + $0x38] sm:$0xff]  ;;  %p1959_p3 = pnand %p1958_p2, %p1952_p13 }
  0x27   : > { %v297_v58 = vrot.slane %v218_v47, 2  ;;  %v236_v62 = vpack.c.bf16 %v218_v47, %v2013_v3  ;;  %v263_v4 = vrot.slane %v220_v49, 1  ;;  %v264_v5 = vrot.slane %v221_v55, 1  ;;  %v2265_v17 = vld [vmem:[#allocation2 + $0x40] sm:$0xff]  ;;  %v225_v36 = vld [vmem:[#allocation2 + $0x48] sm:$0xff] }
  0x28   : > { %1606 = vmatpush3.bf16.msra.mxu0 %v1893_v27  ;;  %v2239_v61 = vsel %vm256_vm0, %v260_v52, %v261_v53  ;;  %1038 = vmatprep.mubr.bf16.mxu1 %v330_v56  ;;  %v300_v8 = vrot.slane %v220_v49, 2  ;;  %v301_v9 = vrot.slane %v221_v55, 2  ;;  %v266_v15 = vrot.slane %v222_v11, 1  ;;  %v2278_v24 = vld [vmem:[%s2198_s8 + $0x20] sm:$0xff]  ;;  %v1910_v27 = vld [vmem:[%s2559_s1 + $0x190] sm:$0xff]   ;;  %v2338_v55 = vld [vmem:[%s2198_s8 + $0x38] sm:$0xff] }
  0x29   : > { %1646 = vmatpush3.bf16.msra.mxu1 %v1894_v28  ;;  %1607 = vmatprep.subr.bf16.mxu0 %v1895_v29  ;;  %v289_v1 = vpack.c.bf16 %v2239_v61, %v259_v51  ;;  %v2250_v2 = vsel %vm293_vm1, %v297_v58, %v298_v54  ;;  %v2263_v14 = vsel %vm256_vm0, %v263_v4, %v264_v5  ;;  %v267_v16 = vrot.slane %v223_v12, 1  ;;  %v2290_v29 = vld [vmem:[%s2198_s8 + $0x28] sm:$0xff]  ;;  %v1916_v48 = vld [vmem:[%s2559_s1 + $0x120] sm:$0xff]   ;;  %v2334_v51 = vld [vmem:[%s2198_s8 + $0x30] sm:$0xff] }
  0x2a   : > { %1647 = vmatprep.subr.bf16.mxu1 %v1896_v30  ;;  %v326_v6 = vpack.c.bf16 %v2250_v2, %v296_v57  ;;  %v303_v18 = vrot.slane %v222_v11, 2  ;;  %v331_v19 = vpack.c.bf16 %v2265_v17, %v222_v11  ;;  %v2269_v20 = vsel %vm293_vm1, %v300_v8, %v301_v9 }
  0x2b   : > { %973 = vmatprep.mubr.bf16.mxu0 %v289_v1  ;;  %v304_v21 = vrot.slane %v223_v12, 2  ;;  %v2281_v25 = vsel %vm256_vm0, %v266_v15, %v267_v16  ;;  %v2283_v26 = vpack.c.bf16 %v222_v11, %v220_v49  ;;  %v204_v28 = vmax.f32 %v2278_v24, 0.0  ;;  %v1917_v49 = vld [vmem:[%s2559_s1 + $0x1e0] sm:$0xff]   ;;  %v1922_v12 = vld [vmem:[%s2559_s1 + $0x1a8] sm:$0xff]  }
  0x2c   : > { %1608 = vmatpush3.bf16.msra.mxu0 %v1897_v31  ;;  %v2294_v30 = vpack.c.bf16 %v2281_v25, %v2263_v14  ;;  %v205_v34 = vmax.f32 %v2290_v29, 0.0  ;;  %v269_v38 = vrot.slane %v2265_v17, 1  ;;  %v306_v41 = vrot.slane %v2265_v17, 2 }
  0x2d   : > { %1648 = vmatpush3.bf16.msra.mxu1 %v1898_v32  ;;  %1673 = vmatprep.subr.bf16.mxu0 %v1899_v37  ;;  %v2297_v31 = vsel %vm293_vm1, %v303_v18, %v304_v21  ;;  %v1911_v32 = vld [vmem:[%s2559_s1 + $0x158] sm:$0xff]   ;;  %212 = vst [vmem:[#allocation2 + $0x51] sm:$0xff] %v204_v28  ;;  %v270_v42 = vrot.slane %v225_v36, 1  ;;  %v307_v47 = vrot.slane %v225_v36, 2  ;;  %v206_v54 = vmax.f32 %v2334_v51, 0.0 }
  0x2e   : > { %1713 = vmatprep.subr.bf16.mxu1 %v1901_v39  ;;  %v2308_v35 = vpack.c.bf16 %v2297_v31, %v2269_v20  ;;  %213 = vst [vmem:[#allocation2 + $0x61] sm:$0xff] %v205_v34  ;;  %v1912_v37 = vld [vmem:[%s2559_s1 + $0x118] sm:$0xff]   ;;  %v207_v11 = vmax.f32 %v2338_v55, 0.0 }
  0x2f   : > { %974 = vmatmul.mubr.bf16.vlgmr.msra.gmra.mrb[0].mxu0 %v236_v62  ;;  %v1914_v39 = vld [vmem:[%s2559_s1 + $0x198] sm:$0xff]   ;;  %v2341_v56 = vsel %vm256_vm0, %v269_v38, %v270_v42  ;;  %v1919_v62 = vld [vmem:[%s2559_s1 + $0x168] sm:$0xff]   ;;  %v2350_v4 = vsel %vm293_vm1, %v306_v41, %v307_v47  ;;  %214 = vst [vmem:[#allocation2 + $0x71] sm:$0xff] %v206_v54 }
  0x30   : > { %1039 = vmatmul.mubr.bf16.vlgmr.msra.gmra.mrb[0].mxu1 %v326_v6  ;;  %1674 = vmatpush3.bf16.msra.mxu0 %v1900_v59  ;;  %v1920_v6 = vld [vmem:[%s2559_s1 + $0x128] sm:$0xff]   ;;  %215 = vst [vmem:[#allocation2 + $0x81] sm:$0xff] %v207_v11  ;;  %v1929_v38 = vld [vmem:[%s2559_s1 + $0x1f8] sm:$0xff]  }
  0x31   : > { %1714 = vmatpush3.bf16.msra.mxu1 %v1902_v60  ;;  %1675 = vmatprep.subr.bf16.mxu0 %v1903_v63  ;;  %v1928_v42 = vld [vmem:[%s2559_s1 + $0x138] sm:$0xff]   ;;  %v1936_v11 = vld [vmem:[%s2559_s1 + $0x228] sm:$0xff]  }
  0x32   : > { %1715 = vmatprep.subr.bf16.mxu1 %v1905_v0  ;;  %1046 = vmatprep.mubr.bf16.mxu1 %v331_v19  ;;  %v1925_v19 = vld [vmem:[%s2559_s1 + $0x1f0] sm:$0xff]   ;;  %v1930_v54 = vld [vmem:[%s2559_s1 + $0x1b8] sm:$0xff]  }
  0x33   : > { %981 = vmatprep.mubr.bf16.mxu0 %v2294_v30 }
  0x34   : > { %1676 = vmatpush3.bf16.msra.mxu0 %v1904_v7  ;;  %v226_v52 = vld [vmem:[#allocation2 + $0x50] sm:$0xff]  ;;  %v227_v53 = vld [vmem:[#allocation2 + $0x58] sm:$0xff]  ;;  %v1921_v7 = vld [vmem:[%s2559_s1 + $0x1e8] sm:$0xff]  }
  0x35   : > { %1716 = vmatpush3.bf16.msra.mxu1 %v1906_v10  ;;  %1677 = vmatprep.subr.bf16.mxu0 %v1907_v13  ;;  %v272_v57 = vrot.slane %v226_v52, 1  ;;  %v273_v58 = vrot.slane %v227_v53, 1  ;;  %v228_v59 = vld [vmem:[#allocation2 + $0x60] sm:$0xff]  ;;  %v309_v60 = vrot.slane %v226_v52, 2  ;;  %v229_v63 = vld [vmem:[#allocation2 + $0x68] sm:$0xff]  ;;  %v2347_v1 = vpack.c.bf16 %v226_v52, %v2265_v17  ;;  %v1923_v13 = vld [vmem:[%s2559_s1 + $0x170] sm:$0xff]  }
  0x36   : > { %1717 = vmatprep.subr.bf16.mxu1 %v1909_v23  ;;  %v332_v0 = vpack.c.bf16 %v228_v59, %v226_v52  ;;  %v310_v5 = vrot.slane %v227_v53, 2  ;;  %v275_v9 = vrot.slane %v228_v59, 1  ;;  %v276_v10 = vrot.slane %v229_v63, 1  ;;  %v1926_v23 = vld [vmem:[%s2559_s1 + $0x1b0] sm:$0xff]   ;;  %v231_v28 = vld [vmem:[#allocation2 + $0x78] sm:$0xff] }
  0x37   : > { %982 = vmatmul.mubr.bf16.gmra.mrb[4].mxu0 %v2283_v26  ;;  %v2359_v8 = vsel %vm256_vm0, %v272_v57, %v273_v58  ;;  %v312_v18 = vrot.slane %v228_v59, 2  ;;  %v313_v21 = vrot.slane %v229_v63, 2  ;;  %v279_v36 = vrot.slane %v231_v28, 1  ;;  %v2407_v47 = vld [vmem:[#allocation2 + $0x80] sm:$0xff]  ;;  %v235_v58 = vld [vmem:[#allocation2 + $0x98] sm:$0xff] }
  0x38   : > { %1047 = vmatmul.mubr.bf16.gmra.mrb[4].mxu1 %v2308_v35  ;;  %1678 = vmatpush3.bf16.msra.mxu0 %v1908_v22  ;;  %v2370_v15 = vpack.c.bf16 %v2359_v8, %v2341_v56  ;;  %v2373_v16 = vsel %vm293_vm1, %v309_v60, %v310_v5  ;;  %v1924_v22 = vld [vmem:[%s2559_s1 + $0x130] sm:$0xff]   ;;  %v316_v41 = vrot.slane %v231_v28, 2  ;;  %v349_v60 = vpack.c.bf16 %v2350_v4, %v2297_v31 }
  0x39   : > { %1718 = vmatpush3.bf16.msra.mxu1 %v1910_v27  ;;  %1679 = vmatprep.subr.bf16.mxu0 %v1911_v32  ;;  %v2377_v17 = vpack.c.bf16 %v2373_v16, %v2350_v4  ;;  %v230_v27 = vld [vmem:[#allocation2 + $0x70] sm:$0xff]  ;;  %v1927_v32 = vld [vmem:[%s2559_s1 + $0x178] sm:$0xff]   ;;  %v336_v4 = vrot.slane %v2407_v47, 1 }
  0x3a   : > { %1719 = vmatprep.subr.bf16.mxu1 %v1913_v33  ;;  %1054 = vmatprep.mubr.bf16.mxu1 %v332_v0  ;;  %v2395_v33 = vsel %vm256_vm0, %v275_v9, %v276_v10  ;;  %v278_v34 = vrot.slane %v230_v27, 1  ;;  %v333_v52 = vpack.c.bf16 %v2407_v47, %v230_v27 }
  0x3b   : > { %989 = vmatprep.mubr.bf16.mxu0 %v2370_v15  ;;  %v342_v10 = vpack.c.bf16 %v2395_v33, %v2359_v8 }
  0x3c   : > { %1680 = vmatpush3.bf16.msra.mxu0 %v1912_v37  ;;  %v315_v37 = vrot.slane %v230_v27, 2 }
  0x3d   : > { %1720 = vmatpush3.bf16.msra.mxu1 %v1914_v39  ;;  %1681 = vmatprep.subr.bf16.mxu0 %v1915_v45  ;;  %v314_v39 = vsel %vm293_vm1, %v312_v18, %v313_v21  ;;  %v2405_v45 = vsel %vm256_vm0, %v278_v34, %v279_v36  ;;  %v1940_v18 = vld [vmem:[%s2560_s2 + $0x8] sm:$0xff]  }
  0x3e   : > { %1721 = vmatprep.subr.bf16.mxu1 %v1917_v49  ;;  %v348_v49 = vpack.c.bf16 %v2269_v20, %v2250_v2  ;;  %v317_v53 = vsel %vm293_vm1, %v315_v37, %v316_v41  ;;  %v1931_v2 = vld [vmem:[%s2559_s1 + $0x200] sm:$0xff]   ;;  %v340_v20 = vpack.c.bf16 %v2263_v14, %v2239_v61  ;;  %v233_v61 = vld [vmem:[#allocation2 + $0x88] sm:$0xff]  ;;  %v341_v14 = vpack.c.bf16 %v2341_v56, %v2281_v25 }
  0x3f   : > { %990 = vmatmul.mubr.bf16.gmra.mrb[8].mxu0 %v2347_v1  ;;  %v2418_v57 = vpack.c.bf16 %v317_v53, %v314_v39  ;;  %v350_v31 = vpack.c.bf16 %v314_v39, %v2373_v16  ;;  %v345_v0 = vrot.slane %v233_v61, 2  ;;  %v337_v5 = vrot.slane %v233_v61, 1  ;;  %v1935_v25 = vld [vmem:[%s2559_s1 + $0x220] sm:$0xff]   ;;  %v1944_v21 = vld [vmem:[%s2560_s2 + $0x28] sm:$0xff]  }
  0x40   : > { %1682 = vmatpush3.bf16.msra.mxu0 %v1916_v48  ;;  %1055 = vmatmul.mubr.bf16.gmra.mrb[8].mxu1 %v2377_v17  ;;  %v239_v48 = vpack.c.bf16 %v230_v27, %v228_v59  ;;  %v1932_v59 = vld [vmem:[%s2559_s1 + $0x208] sm:$0xff]  }
  0x41   : > { %1722 = vmatpush3.bf16.msra.mxu1 %v1918_v50  ;;  %1683 = vmatprep.subr.bf16.mxu0 %v1919_v62  ;;  %v292_v50 = vpack.c.bf16 %v2405_v45, %v2395_v33  ;;  %v361_v62 = vrot.slane %v235_v58, 2 }
  0x42   : > { %1723 = vmatprep.subr.bf16.mxu1 %v1921_v7  ;;  %1062 = vmatprep.mubr.bf16.mxu1 %v333_v52  ;;  %v338_v7 = vsel %vm256_vm0, %v336_v4, %v337_v5 }
  0x43   : > { %997 = vmatprep.mubr.bf16.mxu0 %v292_v50  ;;  %v362_v63 = vsel %vm293_vm1, %v2218_v43, %v361_v62  ;;  %v1934_v43 = vld [vmem:[%s2559_s1 + $0x218] sm:$0xff]   ;;  %v343_v8 = vpack.c.bf16 %v338_v7, %v2405_v45 }
  0x44   : > { %1684 = vmatpush3.bf16.msra.mxu0 %v1920_v6  ;;  %v356_v6 = vrot.slane %v235_v58, 1 }
  0x45   : > { %1724 = vmatpush3.bf16.msra.mxu1 %v1922_v12  ;;  %1685 = vmatprep.subr.bf16.mxu0 %v1923_v13  ;;  %v352_v13 = vpack.c.bf16 %v2013_v3, %v2407_v47  ;;  %v1939_v3 = vld [vmem:[%s2560_s2] sm:$0xff]  }
  0x46   : > { %1725 = vmatprep.subr.bf16.mxu1 %v1925_v19  ;;  %v357_v9 = vsel %vm256_vm0, %v2215_v40, %v356_v6  ;;  %v1937_v40 = vld [vmem:[%s2559_s1 + $0x230] sm:$0xff]   ;;  %v1943_v19 = vld [vmem:[%s2560_s2 + $0x20] sm:$0xff]  }
  0x47   : > { %998 = vmatmul.mubr.bf16.gmra.mrb[12].mxu0 %v239_v48  ;;  %v359_v12 = vpack.c.bf16 %v357_v9, %v338_v7 }
  0x48   : > { %1686 = vmatpush3.bf16.msra.mxu0 %v1924_v22  ;;  %1063 = vmatmul.mubr.bf16.gmra.mrb[12].mxu1 %v2418_v57  ;;  %v1945_v22 = vld [vmem:[%s2560_s2 + $0x30] sm:$0xff]  }
  0x49   : > { %1726 = vmatpush3.bf16.msra.mxu1 %v1926_v23  ;;  %1687 = vmatprep.subr.bf16.mxu0 %v1927_v32  ;;  %v1946_v23 = vld [vmem:[%s2560_s2 + $0x38] sm:$0xff]  }
  0x4a   : > { %1727 = vmatprep.subr.bf16.mxu1 %v1929_v38  ;;  %1103 = vmatprep.mubr.bf16.mxu0 %v348_v49 }
  0x4b   : > { %1168 = vmatprep.mubr.bf16.mxu1 %v2294_v30  ;;  %v1933_v30 = vld [vmem:[%s2559_s1 + $0x210] sm:$0xff]  }
  0x4c   : > { %1688 = vmatpush3.bf16.msra.mxu0 %v1928_v42 }
  0x4d   : > { %1728 = vmatpush3.bf16.msra.mxu1 %v1930_v54  ;;  %1777 = vmatprep.subr.bf16.mxu0 %v1931_v2 }
  0x4e   : > { %1801 = vmatprep.subr.bf16.mxu1 %v1939_v3 }
  0x4f   : > { %1104 = vmatmul.mubr.bf16.vlgmr.msra.gmra.mrb[16].mxu0 %v340_v20 }
  0x50   : > { %1169 = vmatmul.mubr.bf16.vlgmr.msra.gmra.mrb[16].mxu1 %v2283_v26  ;;  %1778 = vmatpush3.bf16.msra.mxu0 %v1931_v2  ;;  %v344_v26 = vrot.slane %v2407_v47, 2 }
  0x51   : > { %1111 = vmatprep.mubr.bf16.mxu0 %v349_v60  ;;  %1779 = vmatprep.subr.bf16.mxu0 %v1932_v59 }
  0x52   : > { %1176 = vmatprep.mubr.bf16.mxu1 %v2370_v15  ;;  %v346_v56 = vsel %vm293_vm1, %v344_v26, %v345_v0  ;;  %v1938_v15 = vld [vmem:[%s2559_s1 + $0x238] sm:$0xff]   ;;  %1802 = vmatpush3.bf16.msra.mxu1 %v1939_v3 }
  0x53   : > { %v364_v16 = vpack.c.bf16 %v362_v63, %v346_v56  ;;  %1803 = vmatprep.subr.bf16.mxu1 %v1940_v18 }
  0x54   : > { %1780 = vmatpush3.bf16.msra.mxu0 %v1932_v59 }
  0x55   : > { %1781 = vmatprep.subr.bf16.mxu0 %v1933_v30 }
  0x56   : > { %1804 = vmatpush3.bf16.msra.mxu1 %v1940_v18 }
  0x57   : > { %1112 = vmatmul.mubr.bf16.gmra.mrb[20].mxu0 %v341_v14 }
  0x58   : > { %1177 = vmatmul.mubr.bf16.gmra.mrb[20].mxu1 %v2347_v1  ;;  %1782 = vmatpush3.bf16.msra.mxu0 %v1933_v30  ;;  %v351_v1 = vpack.c.bf16 %v346_v56, %v317_v53 }
  0x59   : > { %1119 = vmatprep.mubr.bf16.mxu0 %v350_v31  ;;  %1783 = vmatprep.subr.bf16.mxu0 %v1934_v43 }
  0x5a   : > { %1184 = vmatprep.mubr.bf16.mxu1 %v292_v50 }
  0x5c   : > { %1784 = vmatpush3.bf16.msra.mxu0 %v1934_v43 }
  0x5d   : > { %1785 = vmatprep.subr.bf16.mxu0 %v1935_v25 }
  0x5f   : > { %1120 = vmatmul.mubr.bf16.gmra.mrb[24].mxu0 %v342_v10 }
  0x60   : > { %1185 = vmatmul.mubr.bf16.gmra.mrb[24].mxu1 %v239_v48  ;;  %1786 = vmatpush3.bf16.msra.mxu0 %v1935_v25 }
  0x61   : > { %1127 = vmatprep.mubr.bf16.mxu0 %v351_v1  ;;  %1787 = vmatprep.subr.bf16.mxu0 %v1936_v11 }
  0x62   : > { %1192 = vmatprep.mubr.bf16.mxu1 %v359_v12 }
  0x64   : > { %1788 = vmatpush3.bf16.msra.mxu0 %v1936_v11 }
  0x65   : > { %1789 = vmatprep.subr.bf16.mxu0 %v1937_v40 }
  0x67   : > { %1128 = vmatmul.mubr.bf16.gmra.mrb[28].mxu0 %v343_v8 }
  0x68   : > { %1193 = vmatmul.mubr.bf16.gmra.mrb[28].mxu1 %v352_v13  ;;  %1790 = vmatpush3.bf16.msra.mxu0 %v1937_v40 }
  0x69   : > { %1793 = vmatprep.mubr.bf16.mxu0 %v2308_v35  ;;  %1791 = vmatprep.subr.bf16.mxu0 %v1938_v15  ;;  %v1941_v35 = vld [vmem:[%s2560_s2 + $0x10] sm:$0xff]  }
  0x6a   : > { %1805 = vmatprep.subr.bf16.mxu1 %v1941_v35 }
  0x6b   : > { %1806 = vmatpush3.bf16.msra.mxu1 %v1941_v35 }
  0x6c   : > { %1792 = vmatpush3.bf16.msra.mxu0 %v1938_v15 }
  0x6f   : > { %1794 = vmatmul.mubr.bf16.vlgmr.msra.gmra.mrb[32].mxu0 %v2377_v17  ;;  %v1942_v17 = vld [vmem:[%s2560_s2 + $0x18] sm:$0xff]  }
  0x70   : > { %1797 = vmatprep.mubr.bf16.mxu0 %v2418_v57  ;;  %1807 = vmatprep.subr.bf16.mxu1 %v1942_v17 }
  0x71   : > { %1808 = vmatpush3.bf16.msra.mxu1 %v1942_v17 }
  0x72   : > { %1809 = vmatprep.subr.bf16.mxu1 %v1943_v19 }
  0x75   : > { %1810 = vmatpush3.bf16.msra.mxu1 %v1943_v19 }
  0x76   : > { %1811 = vmatprep.subr.bf16.mxu1 %v1944_v21 }
  0x77   : > { %1798 = vmatmul.mubr.bf16.gmra.mrb[36].mxu0 %v364_v16 }
  0x79   : > { %1812 = vmatpush3.bf16.msra.mxu1 %v1944_v21 }
  0x7a   : > { %1813 = vmatprep.subr.bf16.mxu1 %v1945_v22 }
  0x7d   : > { %1814 = vmatpush3.bf16.msra.mxu1 %v1945_v22 }
  0x7e   : > { %1815 = vmatprep.subr.bf16.mxu1 %v1946_v23 }
  0x81   : > { %1816 = vmatpush3.bf16.msra.mxu1 %v1946_v23 }
 0x102   : > { %v1609_v27 = vpop.f32.mrb[0].mxu0 }
 0x103   : > { %v1649_v28 = vpop.f32.mrb[0].mxu1  ;;  %v1610_v32 = vpop.f32.mrb[1].mxu0 }
 0x104   : > { %v1650_v33 = vpop.f32.mrb[1].mxu1  ;;  %v1611_v34 = vadd.f32 %v1610_v32, %v1609_v27  ;;  %v1612_v37 = vpop.f32.mrb[2].mxu0 }
 0x105   : > { %v1651_v36 = vadd.f32 %v1650_v33, %v1649_v28  ;;  %v1652_v38 = vpop.f32.mrb[2].mxu1  ;;  %v1613_v39 = vpop.f32.mrb[3].mxu0 }
 0x106   : > { %v1653_v41 = vpop.f32.mrb[3].mxu1  ;;  %v1614_v45 = vadd.f32 %v1613_v39, %v1612_v37 }
 0x107   : > { %v1041_v42 = vadd.f32 %v1651_v36, %v1611_v34  ;;  %v1654_v47 = vadd.f32 %v1653_v41, %v1652_v38 }
 0x109   : > { %v1044_v48 = vadd.f32 %v1654_v47, %v1614_v45 }
 0x10a   : > { %v1615_v49 = vpop.f32.mrb[4].mxu0 }
 0x10b   : > { %v1655_v50 = vpop.f32.mrb[4].mxu1  ;;  %v1616_v52 = vpop.f32.mrb[5].mxu0 }
 0x10c   : > { %v1656_v53 = vpop.f32.mrb[5].mxu1  ;;  %v1617_v54 = vadd.f32 %v1616_v52, %v1615_v49  ;;  %v1618_v2 = vpop.f32.mrb[6].mxu0 }
 0x10d   : > { %v1657_v57 = vadd.f32 %v1656_v53, %v1655_v50  ;;  %v1658_v20 = vpop.f32.mrb[6].mxu1  ;;  %v1619_v58 = vpop.f32.mrb[7].mxu0 }
 0x10e   : > { %v1659_v59 = vpop.f32.mrb[7].mxu1  ;;  %v1620_v62 = vadd.f32 %v1619_v58, %v1618_v2 }
 0x10f   : > { %v1049_v60 = vadd.f32 %v1657_v57, %v1617_v54  ;;  %v1660_v63 = vadd.f32 %v1659_v59, %v1658_v20 }
 0x111   : > { %v1052_v30 = vadd.f32 %v1660_v63, %v1620_v62 }
 0x112   : > { %v1621_v61 = vpop.f32.mrb[8].mxu0 }
 0x113   : > { %v1661_v14 = vpop.f32.mrb[8].mxu1  ;;  %v1622_v31 = vpop.f32.mrb[9].mxu0 }
 0x114   : > { %v1662_v43 = vpop.f32.mrb[9].mxu1  ;;  %v1623_v26 = vadd.f32 %v1622_v31, %v1621_v61  ;;  %v1624_v4 = vpop.f32.mrb[10].mxu0 }
 0x115   : > { %v1663_v0 = vadd.f32 %v1662_v43, %v1661_v14  ;;  %v1664_v5 = vpop.f32.mrb[10].mxu1  ;;  %v1625_v6 = vpop.f32.mrb[11].mxu0 }
 0x116   : > { %v1665_v25 = vpop.f32.mrb[11].mxu1  ;;  %v1626_v7 = vadd.f32 %v1625_v6, %v1624_v4 }
 0x117   : > { %v1057_v56 = vadd.f32 %v1663_v0, %v1623_v26  ;;  %v1666_v9 = vadd.f32 %v1665_v25, %v1664_v5 }
 0x119   : > { %v1060_v10 = vadd.f32 %v1666_v9, %v1626_v7 }
 0x11a   : > { %v1627_v1 = vpop.f32.mrb[12].mxu0 }
 0x11b   : > { %v1667_v11 = vpop.f32.mrb[12].mxu1  ;;  %v1628_v12 = vpop.f32.mrb[13].mxu0 }
 0x11c   : > { %v1668_v40 = vpop.f32.mrb[13].mxu1  ;;  %v1629_v8 = vadd.f32 %v1628_v12, %v1627_v1  ;;  %v1630_v15 = vpop.f32.mrb[14].mxu0 }
 0x11d   : > { %v1669_v13 = vadd.f32 %v1668_v40, %v1667_v11  ;;  %v1670_v16 = vpop.f32.mrb[14].mxu1  ;;  %v1631_v3 = vpop.f32.mrb[15].mxu0 }
 0x11e   : > { %v1671_v18 = vpop.f32.mrb[15].mxu1  ;;  %v1632_v17 = vadd.f32 %v1631_v3, %v1630_v15 }
 0x11f   : > { %v1065_v35 = vadd.f32 %v1669_v13, %v1629_v8  ;;  %v1672_v19 = vadd.f32 %v1671_v18, %v1670_v16 }
 0x121   : > { %v1068_v21 = vadd.f32 %v1672_v19, %v1632_v17 }
 0x122   : > { %v1689_v22 = vpop.f32.mrb[16].mxu0 }
 0x123   : > { %v1729_v23 = vpop.f32.mrb[16].mxu1  ;;  %v1690_v27 = vpop.f32.mrb[17].mxu0 }
 0x124   : > { %v1730_v28 = vpop.f32.mrb[17].mxu1  ;;  %v1691_v32 = vadd.f32 %v1690_v27, %v1689_v22  ;;  %v1692_v33 = vpop.f32.mrb[18].mxu0 }
 0x125   : > { %v1731_v34 = vadd.f32 %v1730_v28, %v1729_v23  ;;  %v1732_v36 = vpop.f32.mrb[18].mxu1  ;;  %v1693_v37 = vpop.f32.mrb[19].mxu0 }
 0x126   : > { %v1733_v38 = vpop.f32.mrb[19].mxu1  ;;  %v1106_v39 = vadd.f32 %v1691_v32, %v1041_v42  ;;  %v1694_v41 = vadd.f32 %v1693_v37, %v1692_v33 }
 0x127   : > { %v1734_v45 = vadd.f32 %v1733_v38, %v1732_v36 }
 0x128   : > { %v1109_v47 = vadd.f32 %v1694_v41, %v1044_v48  ;;  %v1171_v49 = vadd.f32 %v1731_v34, %v1106_v39 }
 0x12a   : > { %v1695_v50 = vpop.f32.mrb[20].mxu0  ;;  %v1174_v53 = vadd.f32 %v1734_v45, %v1109_v47 }
 0x12b   : > { %v1735_v52 = vpop.f32.mrb[20].mxu1  ;;  %v1696_v54 = vpop.f32.mrb[21].mxu0 }
 0x12c   : > { %v1736_v57 = vpop.f32.mrb[21].mxu1  ;;  %v1697_v2 = vadd.f32 %v1696_v54, %v1695_v50  ;;  %v1698_v20 = vpop.f32.mrb[22].mxu0 }
 0x12d   : > { %v1737_v58 = vadd.f32 %v1736_v57, %v1735_v52  ;;  %v1738_v59 = vpop.f32.mrb[22].mxu1  ;;  %v1699_v62 = vpop.f32.mrb[23].mxu0 }
 0x12e   : > { %v1739_v63 = vpop.f32.mrb[23].mxu1  ;;  %v1114_v61 = vadd.f32 %v1697_v2, %v1049_v60  ;;  %v1700_v14 = vadd.f32 %v1699_v62, %v1698_v20 }
 0x12f   : > { %v1740_v31 = vadd.f32 %v1739_v63, %v1738_v59 }
 0x130   : > { %v1117_v43 = vadd.f32 %v1700_v14, %v1052_v30  ;;  %v1179_v42 = vadd.f32 %v1737_v58, %v1114_v61 }
 0x132   : > { %v1701_v26 = vpop.f32.mrb[24].mxu0  ;;  %v1182_v48 = vadd.f32 %v1740_v31, %v1117_v43 }
 0x133   : > { %v1741_v0 = vpop.f32.mrb[24].mxu1  ;;  %v1702_v4 = vpop.f32.mrb[25].mxu0 }
 0x134   : > { %v1742_v5 = vpop.f32.mrb[25].mxu1  ;;  %v1703_v6 = vadd.f32 %v1702_v4, %v1701_v26  ;;  %v1704_v25 = vpop.f32.mrb[26].mxu0 }
 0x135   : > { %v1743_v7 = vadd.f32 %v1742_v5, %v1741_v0  ;;  %v1744_v9 = vpop.f32.mrb[26].mxu1  ;;  %v1705_v1 = vpop.f32.mrb[27].mxu0 }
 0x136   : > { %v1745_v11 = vpop.f32.mrb[27].mxu1  ;;  %v1122_v12 = vadd.f32 %v1703_v6, %v1057_v56  ;;  %v1706_v40 = vadd.f32 %v1705_v1, %v1704_v25  ;;  %v1947_v25 = vld [vmem:[%s2198_s8] sm:$0xff] }
 0x137   : > { %v1746_v8 = vadd.f32 %v1745_v11, %v1744_v9 }
 0x138   : > { %v1125_v13 = vadd.f32 %v1706_v40, %v1060_v10  ;;  %v1187_v60 = vadd.f32 %v1743_v7, %v1122_v12  ;;  %v1948_v12 = vld [vmem:[%s2198_s8 + $0x8] sm:$0xff] }
 0x13a   : > { %v1707_v15 = vpop.f32.mrb[28].mxu0  ;;  %v1190_v30 = vadd.f32 %v1746_v8, %v1125_v13 }
 0x13b   : > { %v1747_v16 = vpop.f32.mrb[28].mxu1  ;;  %v1708_v3 = vpop.f32.mrb[29].mxu0 }
 0x13c   : > { %v1748_v18 = vpop.f32.mrb[29].mxu1  ;;  %v1709_v17 = vadd.f32 %v1708_v3, %v1707_v15  ;;  %v1710_v19 = vpop.f32.mrb[30].mxu0 }
 0x13d   : > { %v1749_v22 = vadd.f32 %v1748_v18, %v1747_v16  ;;  %v1750_v23 = vpop.f32.mrb[30].mxu1  ;;  %v1711_v27 = vpop.f32.mrb[31].mxu0 }
 0x13e   : > { %v1751_v28 = vpop.f32.mrb[31].mxu1  ;;  %v1130_v32 = vadd.f32 %v1709_v17, %v1065_v35  ;;  %v1712_v33 = vadd.f32 %v1711_v27, %v1710_v19 }
 0x13f   : > { %v1752_v34 = vadd.f32 %v1751_v28, %v1750_v23 }
 0x140   : > { %v1133_v36 = vadd.f32 %v1712_v33, %v1068_v21  ;;  %v1195_v56 = vadd.f32 %v1749_v22, %v1130_v32 }
 0x142   : > { %v1795_v37 = vpop.f32.mrb[32].mxu0  ;;  %v1198_v38 = vadd.f32 %v1752_v34, %v1133_v36 }
 0x143   : > { %v1244_v10 = vadd.f32 %v1795_v37, %v1179_v42  ;;  %v1235_v39 = vpop.f32.mrb[33].mxu0 }
 0x144   : > { %v1236_v41 = vadd.f32 %v1235_v39, %v1171_v49  ;;  %v1796_v45 = vpop.f32.mrb[34].mxu0 }
 0x145   : > { %v1247_v47 = vadd.f32 %v1796_v45, %v1182_v48  ;;  %v1238_v50 = vpop.f32.mrb[35].mxu0  ;;  %v1268_v54 = vmax.f32 %v1244_v10, 0.0 }
 0x146   : > { %v1239_v52 = vadd.f32 %v1238_v50, %v1174_v53  ;;  %v1266_v2 = vmax.f32 %v1236_v41, 0.0 }
 0x147   : > { %v1269_v57 = vmax.f32 %v1247_v47, 0.0 }
 0x148   : > { %v1267_v20 = vmax.f32 %v1239_v52, 0.0 }
 0x149   : > { %v1275_v58 = vpack.c.bf16 %v1269_v57, %v1268_v54 }
 0x14a   : > { %v1274_v59 = vpack.c.bf16 %v1267_v20, %v1266_v2  ;;  %v1799_v35 = vpop.f32.mrb[36].mxu0 }
 0x14b   : > { %v1260_v62 = vadd.f32 %v1799_v35, %v1195_v56  ;;  %v1251_v63 = vpop.f32.mrb[37].mxu0 }
 0x14c   : > { %v1252_v21 = vadd.f32 %v1251_v63, %v1187_v60  ;;  %v1800_v61 = vpop.f32.mrb[38].mxu0  ;;  %1817 = vmatprep.mubr.bf16.mxu1 %v1274_v59 }
 0x14d   : > { %v1263_v14 = vadd.f32 %v1800_v61, %v1198_v38  ;;  %v1254_v49 = vpop.f32.mrb[39].mxu0  ;;  %1818 = vmatmul.mubr.bf16.vlgmr.msra.gmra.mrb[32].mxu1 %v1275_v58  ;;  %v1272_v53 = vmax.f32 %v1260_v62, 0.0 }
 0x14e   : > { %v1255_v31 = vadd.f32 %v1254_v49, %v1190_v30  ;;  %v1270_v42 = vmax.f32 %v1252_v21, 0.0 }
 0x14f   : > { %v1273_v43 = vmax.f32 %v1263_v14, 0.0 }
 0x150   : > { %v1271_v26 = vmax.f32 %v1255_v31, 0.0 }
 0x151   : > { %v1277_v0 = vpack.c.bf16 %v1273_v43, %v1272_v53 }
 0x152   : > { %v1276_v48 = vpack.c.bf16 %v1271_v26, %v1270_v42 }
 0x154   : > { %1821 = vmatprep.mubr.bf16.mxu1 %v1276_v48 }
 0x155   : > { %1822 = vmatmul.mubr.bf16.gmra.mrb[36].mxu1 %v1277_v0 }
 0x220   : > { %v1819_v4 = vpop.f32.mrb[32].mxu1 }
 0x221   : > { %v1409_v5 = vadd.f32 %v1819_v4, %v2221_v44  ;;  %v1376_v6 = vpop.f32.mrb[33].mxu1 }
 0x222   : > { %v1407_v7 = vadd.f32 %v1947_v25, %v1376_v6  ;;  %v1820_v9 = vpop.f32.mrb[34].mxu1 }
 0x223   : > { %1417 = vst [vmem:[%s163_s7 + $0x10] sm:$0xff] %v1409_v5  ;;  %v1410_v1 = vadd.f32 %v1820_v9, %v2225_v46  ;;  %v1379_v11 = vpop.f32.mrb[35].mxu1 }
 0x224   : > { %1415 = vst [vmem:[%s163_s7] sm:$0xff] %v1407_v7  ;;  %v1408_v40 = vadd.f32 %v1948_v12, %v1379_v11 }
 0x225   : > { %1418 = vst [vmem:[%s163_s7 + $0x18] sm:$0xff] %v1410_v1 }
 0x226   : > { %1416 = vst [vmem:[%s163_s7 + $0x8] sm:$0xff] %v1408_v40 }
 0x228   : > { %v1823_v8 = vpop.f32.mrb[36].mxu1 }
 0x229   : > { %v1413_v44 = vadd.f32 %v1823_v8, %v2334_v51  ;;  %v1392_v13 = vpop.f32.mrb[37].mxu1 }
 0x22a   : > { %v1411_v60 = vadd.f32 %v1392_v13, %v2278_v24  ;;  %v1824_v15 = vpop.f32.mrb[38].mxu1 }
 0x22b   : > { %1421 = vst [vmem:[%s163_s7 + $0x30] sm:$0xff] %v1413_v44  ;;  %v1414_v46 = vadd.f32 %v1824_v15, %v2338_v55  ;;  %v1395_v16 = vpop.f32.mrb[39].mxu1 }
 0x22c   : > { %1419 = vst [vmem:[%s163_s7 + $0x20] sm:$0xff] %v1411_v60  ;;  %v1412_v51 = vadd.f32 %v1395_v16, %v2290_v29 }
 0x22d   : > { %1422 = vst [vmem:[%s163_s7 + $0x38] sm:$0xff] %v1414_v46 }
 0x22e   : > { %1420 = vst [vmem:[%s163_s7 + $0x28] sm:$0xff] %v1412_v51 }
 0x22f   : > { %1962 = shalt.err (!%p1959_p3)
}
 0x230   : > { %s1963_s26 = scalar_lea.hbm %s2510_s17, 1024  ;;  %s1967_s29 = scalar_lea.hbm %s2561_s3, 2048 }
 0x231   : > { %p1964_p4 = scmp.ne.s32.totalorder %s2510_s17, %s1963_s26  ;;  %p1968_p9 = scmp.lt.u32.totalorder %s2510_s17, %s2561_s3 }
 0x232   : > { %p1969_p10 = scmp.lt.u32.totalorder %s1967_s29, %s1963_s26  ;;  %p1971_p12 = scmp.lt.u32.totalorder %s1963_s26, %s2510_s17 }
 0x233   : > { %p1965_p7 = pnand %p1964_p4, %p2075_p5 }
 0x234   : > { %p1970_p11 = por %p1969_p10, %p1968_p9 }
 0x235   : > { %p1966_p8 = pneg %p1965_p7 }
 0x236   : > { %p1972_p13 = por %p1971_p12, %p1970_p11 }
 0x238   : > { %p1973_p0 = pnand %p1972_p13, %p1966_p8 }
 0x23a   : > { %1976 = shalt.err (!%p1973_p0)
}
 0x23b   : > { %s2015_s5 = smov 128   ;;  %s2016_s6 = smov 8  }
 0x23c   : > { %1825 = dma.vmem_to_hbm [thread:$0]  (%p2075_p5), %s2512_s10, 1024, %s2510_s17, %s2517_s16, %s2015_s5, %s2015_s5, %s2016_s6  }
 0x23d PF: > { %p1831_p1 = scmp.ge.s32.totalorder %s2011_s15, 2  ;;  %s1452_s7 = sand.u32 1, %s1999_s12  }
 0x23e   : > { %s1453_s9 = scalar_lea.sflag [#allocation4], %s1452_s7 }
 0x23f   : > { %p1828_p2 = pnand %p1831_p1, %p2079_p6 }
 0x241   : > { %1994 = dma.done.wait (!%p1828_p2), %s1453_s9, 1024  }
 0x242   : > { %1996 = vsyncadd (!%p1828_p2), %s1453_s9, 4294966272  ;;  %p13_p3 = scmp.ge.s32.totalorder %s2062_s18, 4   ;;  %s2564_s12 = smov %s2003_s13 }
 0x243   : > { %s2565_s13 = smov %s2007_s14  ;;  %s2566_s14 = smov %s2073_s21 }
 0x244   : > { %s2567_s15 = smov %s2062_s18  ;;  %15 = sbr.rel (!%p13_p3) target bundleno = 3 (0x3), region = 69 }
 0x24b   :  { %1458 = vsyncpa [#allocation4], 1 }
 0x24c   :  { %1460 = vsyncpa [#allocation4 + $0x1], 1 }

</bundles_post_ra>
